<compile_context>
chip_gen: v6e
topology: v6e:2x2x1
jax: 0.10.0
libtpu: 0.0.40
codegen_flags: <defaults>
</compile_context>

<pallas_src>
import functools

import numpy as np

import jax
import jax.numpy as jnp
from jax import lax
from jax.experimental import pallas as pl
from jax.experimental.pallas import tpu as pltpu


def _hflip_crop_kernel(flip_ref, kx_ref, ky_ref, x_ref, revb_ref, wmap_ref, o_ref,
                       *, Nb, C, H, W):
    """Flip + integer-shift 'crop' with zero padding, lane-dense (C, H*W) layout.

    flip/kx/ky_ref : SMEM int32 (N_pad,)  scalar-prefetched per-image parameters
    x_ref    : VMEM (Nb, C, H*W)   input block (native dtype)
    revb_ref : VMEM (H*W, H*W)     constant block-diag anti-diagonal permutation (h-flip)
    wmap_ref : VMEM (1, H*W)       constant map: flat position p -> column w = p % W
    o_ref    : VMEM (Nb, C, H*W)   output block
    """
    HW = H * W
    g = pl.program_id(0)

    # Loop-invariant constants, hoisted out of the per-image loop.
    pidx = lax.broadcasted_iota(jnp.int32, (1, HW), 1)   # flat spatial position p
    ww = wmap_ref[...]                                   # column index w = p % W

    def body(i, carry):
        n = g * Nb + i
        flip = flip_ref[n]
        kx = kx_ref[n]
        ky = ky_ref[n]
        kxe = jnp.where(flip > 0, -kx, kx)               # effective horizontal shift

        img = x_ref[i]                                   # (C, HW), 256-lane dense rows

        # Optional horizontal flip via constant permutation matmul (exact: one 1.0/column).
        flipped = jnp.dot(img, revb_ref[...],
                          preferred_element_type=jnp.float32).astype(img.dtype)
        sel = jnp.where(flip > 0, flipped, img)

        # Fused vertical+horizontal shift: single XLU lane rotate on the flattened HW axis.
        s = ky * W + kxe                                  # |s| < HW since max_pixels < H, W
        shift = jnp.where(s > 0, HW - s, -s)              # (-s) mod HW, branch-free
        rolled = pltpu.roll(sel, shift, axis=1)

        # padding_mode='zeros': zero positions whose source pixel fell outside the image.
        # Row validity in flat form (no div/mod): 0 <= h+ky < H  <=>  -ky*W <= p < (H-ky)*W.
        ok = ((pidx >= -ky * W) & (pidx < (H - ky) * W)
              & (ww + kxe >= 0) & (ww + kxe < W))
        o_ref[i] = jnp.where(ok, rolled, jnp.zeros_like(rolled))
        return carry

    lax.fori_loop(0, Nb, body, 0, unroll=min(4, Nb))


def _pick_batch_block(N, per_image_vmem_bytes, *, target_bytes=4 << 20, max_images=128):
    """Images per grid step: big blocks (<= ~4 MiB padded VMEM, <= 128 images).

    Keeps >= 2 grid steps when there is enough work so dimension_semantics=("parallel",)
    can split across v7x's two TensorCores; tiny batches run in a single step (v5e/v6e).
    """
    nb = max(1, min(N, max_images, target_bytes // max(per_image_vmem_bytes, 1)))
    if nb >= N and N > 8:
        nb = -(-N // 2)          # ceil(N/2) -> grid of 2
    return int(nb)


def horizontal_flip_random_crop(x, key, *, max_pixels, width, padding_mode="zeros"):
    """JAX/Pallas equivalent of HorizontalFlipRandomCrop.forward (padding_mode='zeros')."""
    assert padding_mode == "zeros", "only padding_mode='zeros' implemented"
    N, C, H, W = x.shape
    assert H == width and W == width, "module assumes square images of size `width`"
    M = max_pixels
    assert 0 <= M < H and M < W
    assert jnp.issubdtype(x.dtype, jnp.floating), "MXU flip path needs a float dtype"

    # --- random parameters (plain JAX glue, mirroring the torch sampling) ---
    k1, k2 = jax.random.split(key)
    bern = jax.random.bernoulli(k1, 0.5, (N,))               # r_sign = bern*2 - 1
    flip = (1 - bern.astype(jnp.int32))                      # flip iff r_sign == -1
    bias = jax.random.randint(k2, (N, 2), -M, M + 1, dtype=jnp.int32)
    kx = bias[:, 0]                                          # x translation (pixels)
    ky = bias[:, 1]                                          # y translation (pixels)

    HW = H * W
    x3 = x.reshape(N, C, HW)                                 # lane-dense minor dim (free bitcast)

    # --- batch blocking (based on padded-VMEM footprint; C pads to 8 sublanes) ---
    padded_c = ((C + 7) // 8) * 8
    per_image_vmem = padded_c * HW * x.dtype.itemsize
    Nb = _pick_batch_block(N, per_image_vmem)
    G = pl.cdiv(N, Nb)
    N_pad = G * Nb
    if N_pad != N:                                           # non-divisor N: pad, slice later
        x3 = jnp.pad(x3, ((0, N_pad - N), (0, 0), (0, 0)))
        flip_p = jnp.pad(flip, (0, N_pad - N))
        kx_p = jnp.pad(kx, (0, N_pad - N))
        ky_p = jnp.pad(ky, (0, N_pad - N))
    else:
        flip_p, kx_p, ky_p = flip, kx, ky

    # Constant block-diagonal horizontal-flip permutation: reverses each W-chunk of the
    # flattened H*W axis.  Exact for float dtypes (pure permutation).
    rev_w = np.eye(W, dtype=np.float32)[::-1]
    revb = jnp.asarray(np.kron(np.eye(H, dtype=np.float32), rev_w), dtype=x.dtype)
    # Constant column map w = p % W (avoids in-kernel vector div/mod).
    wmap = jnp.asarray((np.arange(HW, dtype=np.int32) % W).reshape(1, HW))

    # --- VMEM budget: 2x double-buffered (in + out) blocks + constants + headroom ---
    block_vmem = Nb * padded_c * HW * x.dtype.itemsize
    const_vmem = HW * HW * x.dtype.itemsize + HW * 4
    footprint = 2 * 2 * block_vmem + 2 * const_vmem + (1 << 20)
    vmem_limit = int(min(48 << 20, max(16 << 20, 3 * footprint // 2)))  # safe on v7x (64 MiB)

    grid_spec = pltpu.PrefetchScalarGridSpec(
        num_scalar_prefetch=3,
        grid=(G,),
        in_specs=[
            pl.BlockSpec((Nb, C, HW), lambda g, f_r, kx_r, ky_r: (g, 0, 0)),
            pl.BlockSpec((HW, HW), lambda g, f_r, kx_r, ky_r: (0, 0)),
            pl.BlockSpec((1, HW), lambda g, f_r, kx_r, ky_r: (0, 0)),
        ],
        out_specs=pl.BlockSpec((Nb, C, HW), lambda g, f_r, kx_r, ky_r: (g, 0, 0)),
    )

    out = pl.pallas_call(
        functools.partial(_hflip_crop_kernel, Nb=Nb, C=C, H=H, W=W),
        out_shape=jax.ShapeDtypeStruct((N_pad, C, HW), x.dtype),
        grid_spec=grid_spec,
        compiler_params=pltpu.CompilerParams(
            dimension_semantics=("parallel",),
            vmem_limit_bytes=vmem_limit,
        ),
    )(flip_p, kx_p, ky_p, x3, revb, wmap)

    out = out[:N].reshape(N, C, H, W)
    # Return device arrays (no host sync here).
    return out, (flip, kx, ky)


def _reference(x, flip, kx, ky):
    """Pure-numpy reference of the reduced semantics (nearest / zeros)."""
    N, C, H, W = x.shape
    out = np.zeros_like(x)
    for n in range(N):
        for h in range(H):
            iy = h + int(ky[n])
            if not (0 <= iy < H):
                continue
            for w in range(W):
                base = (W - 1 - w) if flip[n] else w
                ix = base + int(kx[n])
                if 0 <= ix < W:
                    out[n, :, h, w] = x[n, :, iy, ix]
    return out


if __name__ == "__main__":
    # Module config (deterministic, in-script): max_pixels=3, width=16, padding_mode='zeros'
    max_pixels, width = 3, 16
    N, C, H, W = 2, 4, 16, 16

    key = jax.random.PRNGKey(0)
    k_in, k_aug = jax.random.split(key)
    x = jax.random.normal(k_in, (N, C, H, W), dtype=jnp.float32)

    out, (flip, kx, ky) = horizontal_flip_random_crop(
        x, k_aug, max_pixels=max_pixels, width=width, padding_mode="zeros"
    )
    out = jax.block_until_ready(out)

    ref = _reference(np.asarray(x), np.asarray(flip), np.asarray(kx), np.asarray(ky))
    assert out.shape == (N, C, H, W) and out.dtype == x.dtype
    np.testing.assert_allclose(np.asarray(out), ref, rtol=1e-6, atol=1e-6)

    print("KERNEL_OK")
</pallas_src>

<mosaic_0001>
module attributes {stable_mosaic.version = 11 : i64} {
  func.func @_hflip_crop_kernel(%arg0: i32, %arg1: memref<2xi32, #tpu.memory_space<smem>>, %arg2: memref<2xi32, #tpu.memory_space<smem>>, %arg3: memref<2xi32, #tpu.memory_space<smem>>, %arg4: memref<2x4x256xf32, #tpu.memory_space<vmem>>, %arg5: memref<256x256xf32, #tpu.memory_space<vmem>>, %arg6: memref<1x256xi32, #tpu.memory_space<vmem>>, %arg7: memref<2x4x256xf32, #tpu.memory_space<vmem>>) attributes {dimension_semantics = [#tpu.dimension_semantics<parallel>], iteration_bounds = array<i64: 1>, scalar_prefetch = 3 : i64, scratch_operands = 0 : i64, tpu.core_type = #tpu.core_type<tc>, window_params = [{transform_indices = @transform_0, window_bounds = array<i64: 2, 4, 256>}, {pipeline_mode = #tpu.pipeline_mode<synchronous>, transform_indices = @transform_1, window_bounds = array<i64: 256, 256>}, {pipeline_mode = #tpu.pipeline_mode<synchronous>, transform_indices = @transform_2, window_bounds = array<i64: 1, 256>}, {transform_indices = @transform_3, window_bounds = array<i64: 2, 4, 256>}]} {
    %0 = tpu.iota {dimensions = array<i32: 1>} : vector<1x256xi32>
    %c0 = arith.constant 0 : index
    %c0_0 = arith.constant 0 : index
    %1 = vector.load %arg6[%c0, %c0_0] : memref<1x256xi32, #tpu.memory_space<vmem>>, vector<1x256xi32>
    %c0_i32 = arith.constant 0 : i32
    %c2_i32 = arith.constant 2 : i32
    %2 = arith.muli %arg0, %c2_i32 : i32
    %3 = arith.addi %2, %c0_i32 : i32
    %4 = arith.index_cast %3 : i32 to index
    %5 = memref.load %arg1[%4] : memref<2xi32, #tpu.memory_space<smem>>
    %6 = arith.index_cast %3 : i32 to index
    %7 = memref.load %arg2[%6] : memref<2xi32, #tpu.memory_space<smem>>
    %8 = arith.index_cast %3 : i32 to index
    %9 = memref.load %arg3[%8] : memref<2xi32, #tpu.memory_space<smem>>
    %c0_i32_1 = arith.constant 0 : i32
    %10 = arith.cmpi sgt, %5, %c0_i32_1 : i32
    %c0_i32_2 = arith.constant 0 : i32
    %11 = arith.subi %c0_i32_2, %7 : i32
    %12 = arith.select %10, %11, %7 : i32
    %13 = arith.index_cast %c0_i32 : i32 to index
    %c0_3 = arith.constant 0 : index
    %c0_4 = arith.constant 0 : index
    %14 = vector.load %arg4[%13, %c0_3, %c0_4] : memref<2x4x256xf32, #tpu.memory_space<vmem>>, vector<1x4x256xf32>
    %15 = vector.shape_cast %14 : vector<1x4x256xf32> to vector<4x256xf32>
    %c0_5 = arith.constant 0 : index
    %c0_6 = arith.constant 0 : index
    %16 = vector.load %arg5[%c0_5, %c0_6] : memref<256x256xf32, #tpu.memory_space<vmem>>, vector<256x256xf32>
    %cst = arith.constant dense<0.000000e+00> : vector<4x256xf32>
    %17 = tpu.matmul %15, %16, %cst {dimension_numbers = #tpu.dot_dimension_numbers<[1], [0], [0], [1], [0, 0, 1, 1], [], []>} : vector<4x256xf32>, vector<256x256xf32>, vector<4x256xf32> -> vector<4x256xf32>
    %c0_i32_7 = arith.constant 0 : i32
    %18 = arith.cmpi sgt, %5, %c0_i32_7 : i32
    %19 = arith.select %18, %17, %15 : vector<4x256xf32>
    %c16_i32 = arith.constant 16 : i32
    %20 = arith.muli %9, %c16_i32 : i32
    %21 = arith.addi %20, %12 : i32
    %c0_i32_8 = arith.constant 0 : i32
    %22 = arith.cmpi sgt, %21, %c0_i32_8 : i32
    %c256_i32 = arith.constant 256 : i32
    %23 = arith.subi %c256_i32, %21 : i32
    %c0_i32_9 = arith.constant 0 : i32
    %24 = arith.subi %c0_i32_9, %21 : i32
    %25 = arith.select %22, %23, %24 : i32
    %26 = tpu.dynamic_rotate %19 by %25 dim 1 : vector<4x256xf32>, i32 -> vector<4x256xf32>
    %c0_i32_10 = arith.constant 0 : i32
    %27 = arith.subi %c0_i32_10, %9 : i32
    %c16_i32_11 = arith.constant 16 : i32
    %28 = arith.muli %27, %c16_i32_11 : i32
    %29 = vector.broadcast %28 : i32 to vector<1x256xi32>
    %30 = arith.cmpi sge, %0, %29 : vector<1x256xi32>
    %c16_i32_12 = arith.constant 16 : i32
    %31 = arith.subi %c16_i32_12, %9 : i32
    %c16_i32_13 = arith.constant 16 : i32
    %32 = arith.muli %31, %c16_i32_13 : i32
    %33 = vector.broadcast %32 : i32 to vector<1x256xi32>
    %34 = arith.cmpi slt, %0, %33 : vector<1x256xi32>
    %35 = arith.andi %30, %34 : vector<1x256xi1>
    %36 = vector.broadcast %12 : i32 to vector<1x256xi32>
    %37 = arith.addi %1, %36 : vector<1x256xi32>
    %c0_i32_14 = arith.constant 0 : i32
    %38 = vector.broadcast %c0_i32_14 : i32 to vector<1x256xi32>
    %39 = arith.cmpi sge, %37, %38 : vector<1x256xi32>
    %40 = arith.andi %35, %39 : vector<1x256xi1>
    %41 = vector.broadcast %12 : i32 to vector<1x256xi32>
    %42 = arith.addi %1, %41 : vector<1x256xi32>
    %c16_i32_15 = arith.constant 16 : i32
    %43 = vector.broadcast %c16_i32_15 : i32 to vector<1x256xi32>
    %44 = arith.cmpi slt, %42, %43 : vector<1x256xi32>
    %45 = arith.andi %40, %44 : vector<1x256xi1>
    %cst_16 = arith.constant 0.000000e+00 : f32
    %46 = vector.broadcast %cst_16 : f32 to vector<4x256xf32>
    %47 = vector.shape_cast %45 : vector<1x256xi1> to vector<1x256xi1>
    %48 = vector.broadcast %47 : vector<1x256xi1> to vector<4x256xi1>
    %49 = arith.select %48, %26, %46 : vector<4x256xi1>, vector<4x256xf32>
    %50 = arith.index_cast %c0_i32 : i32 to index
    %c0_17 = arith.constant 0 : index
    %c0_18 = arith.constant 0 : index
    %51 = vector.load %arg7[%50, %c0_17, %c0_18] : memref<2x4x256xf32, #tpu.memory_space<vmem>>, vector<1x4x256xf32>
    %52 = vector.shape_cast %51 : vector<1x4x256xf32> to vector<4x256xf32>
    %53 = vector.shape_cast %49 : vector<4x256xf32> to vector<1x4x256xf32>
    tpu.vector_store %arg7[%50, %c0_17, %c0_18], %53 {strides = array<i32>} : memref<2x4x256xf32, #tpu.memory_space<vmem>>, vector<1x4x256xf32>,
    %c1_i32 = arith.constant 1 : i32
    %c2_i32_19 = arith.constant 2 : i32
    %54 = arith.muli %arg0, %c2_i32_19 : i32
    %55 = arith.addi %54, %c1_i32 : i32
    %56 = arith.index_cast %55 : i32 to index
    %57 = memref.load %arg1[%56] : memref<2xi32, #tpu.memory_space<smem>>
    %58 = arith.index_cast %55 : i32 to index
    %59 = memref.load %arg2[%58] : memref<2xi32, #tpu.memory_space<smem>>
    %60 = arith.index_cast %55 : i32 to index
    %61 = memref.load %arg3[%60] : memref<2xi32, #tpu.memory_space<smem>>
    %c0_i32_20 = arith.constant 0 : i32
    %62 = arith.cmpi sgt, %57, %c0_i32_20 : i32
    %c0_i32_21 = arith.constant 0 : i32
    %63 = arith.subi %c0_i32_21, %59 : i32
    %64 = arith.select %62, %63, %59 : i32
    %65 = arith.index_cast %c1_i32 : i32 to index
    %c0_22 = arith.constant 0 : index
    %c0_23 = arith.constant 0 : index
    %66 = vector.load %arg4[%65, %c0_22, %c0_23] : memref<2x4x256xf32, #tpu.memory_space<vmem>>, vector<1x4x256xf32>
    %67 = vector.shape_cast %66 : vector<1x4x256xf32> to vector<4x256xf32>
    %c0_24 = arith.constant 0 : index
    %c0_25 = arith.constant 0 : index
    %68 = vector.load %arg5[%c0_24, %c0_25] : memref<256x256xf32, #tpu.memory_space<vmem>>, vector<256x256xf32>
    %cst_26 = arith.constant dense<0.000000e+00> : vector<4x256xf32>
    %69 = tpu.matmul %67, %68, %cst_26 {dimension_numbers = #tpu.dot_dimension_numbers<[1], [0], [0], [1], [0, 0, 1, 1], [], []>} : vector<4x256xf32>, vector<256x256xf32>, vector<4x256xf32> -> vector<4x256xf32>
    %c0_i32_27 = arith.constant 0 : i32
    %70 = arith.cmpi sgt, %57, %c0_i32_27 : i32
    %71 = arith.select %70, %69, %67 : vector<4x256xf32>
    %c16_i32_28 = arith.constant 16 : i32
    %72 = arith.muli %61, %c16_i32_28 : i32
    %73 = arith.addi %72, %64 : i32
    %c0_i32_29 = arith.constant 0 : i32
    %74 = arith.cmpi sgt, %73, %c0_i32_29 : i32
    %c256_i32_30 = arith.constant 256 : i32
    %75 = arith.subi %c256_i32_30, %73 : i32
    %c0_i32_31 = arith.constant 0 : i32
    %76 = arith.subi %c0_i32_31, %73 : i32
    %77 = arith.select %74, %75, %76 : i32
    %78 = tpu.dynamic_rotate %71 by %77 dim 1 : vector<4x256xf32>, i32 -> vector<4x256xf32>
    %c0_i32_32 = arith.constant 0 : i32
    %79 = arith.subi %c0_i32_32, %61 : i32
    %c16_i32_33 = arith.constant 16 : i32
    %80 = arith.muli %79, %c16_i32_33 : i32
    %81 = vector.broadcast %80 : i32 to vector<1x256xi32>
    %82 = arith.cmpi sge, %0, %81 : vector<1x256xi32>
    %c16_i32_34 = arith.constant 16 : i32
    %83 = arith.subi %c16_i32_34, %61 : i32
    %c16_i32_35 = arith.constant 16 : i32
    %84 = arith.muli %83, %c16_i32_35 : i32
    %85 = vector.broadcast %84 : i32 to vector<1x256xi32>
    %86 = arith.cmpi slt, %0, %85 : vector<1x256xi32>
    %87 = arith.andi %82, %86 : vector<1x256xi1>
    %88 = vector.broadcast %64 : i32 to vector<1x256xi32>
    %89 = arith.addi %1, %88 : vector<1x256xi32>
    %c0_i32_36 = arith.constant 0 : i32
    %90 = vector.broadcast %c0_i32_36 : i32 to vector<1x256xi32>
    %91 = arith.cmpi sge, %89, %90 : vector<1x256xi32>
    %92 = arith.andi %87, %91 : vector<1x256xi1>
    %93 = vector.broadcast %64 : i32 to vector<1x256xi32>
    %94 = arith.addi %1, %93 : vector<1x256xi32>
    %c16_i32_37 = arith.constant 16 : i32
    %95 = vector.broadcast %c16_i32_37 : i32 to vector<1x256xi32>
    %96 = arith.cmpi slt, %94, %95 : vector<1x256xi32>
    %97 = arith.andi %92, %96 : vector<1x256xi1>
    %cst_38 = arith.constant 0.000000e+00 : f32
    %98 = vector.broadcast %cst_38 : f32 to vector<4x256xf32>
    %99 = vector.shape_cast %97 : vector<1x256xi1> to vector<1x256xi1>
    %100 = vector.broadcast %99 : vector<1x256xi1> to vector<4x256xi1>
    %101 = arith.select %100, %78, %98 : vector<4x256xi1>, vector<4x256xf32>
    %102 = arith.index_cast %c1_i32 : i32 to index
    %c0_39 = arith.constant 0 : index
    %c0_40 = arith.constant 0 : index
    %103 = vector.load %arg7[%102, %c0_39, %c0_40] : memref<2x4x256xf32, #tpu.memory_space<vmem>>, vector<1x4x256xf32>
    %104 = vector.shape_cast %103 : vector<1x4x256xf32> to vector<4x256xf32>
    %105 = vector.shape_cast %101 : vector<4x256xf32> to vector<1x4x256xf32>
    tpu.vector_store %arg7[%102, %c0_39, %c0_40], %105 {strides = array<i32>} : memref<2x4x256xf32, #tpu.memory_space<vmem>>, vector<1x4x256xf32>,
    %c2_i32_41 = arith.constant 2 : i32
    return
  }
  func.func @transform_0(%arg0: i32, %arg1: memref<2xi32, #tpu.memory_space<smem>>, %arg2: memref<2xi32, #tpu.memory_space<smem>>, %arg3: memref<2xi32, #tpu.memory_space<smem>>) -> (i32, i32, i32) {
    %c0_i32 = arith.constant 0 : i32
    %c0_i32_0 = arith.constant 0 : i32
    %c0_i32_1 = arith.constant 0 : i32
    return %arg0, %c0_i32, %c0_i32_0 : i32, i32, i32
  }
  func.func @transform_1(%arg0: i32, %arg1: memref<2xi32, #tpu.memory_space<smem>>, %arg2: memref<2xi32, #tpu.memory_space<smem>>, %arg3: memref<2xi32, #tpu.memory_space<smem>>) -> (i32, i32) {
    %c0_i32 = arith.constant 0 : i32
    %c0_i32_0 = arith.constant 0 : i32
    %c0_i32_1 = arith.constant 0 : i32
    return %c0_i32, %c0_i32_0 : i32, i32
  }
  func.func @transform_2(%arg0: i32, %arg1: memref<2xi32, #tpu.memory_space<smem>>, %arg2: memref<2xi32, #tpu.memory_space<smem>>, %arg3: memref<2xi32, #tpu.memory_space<smem>>) -> (i32, i32) {
    %c0_i32 = arith.constant 0 : i32
    %c0_i32_0 = arith.constant 0 : i32
    %c0_i32_1 = arith.constant 0 : i32
    return %c0_i32, %c0_i32_0 : i32, i32
  }
  func.func @transform_3(%arg0: i32, %arg1: memref<2xi32, #tpu.memory_space<smem>>, %arg2: memref<2xi32, #tpu.memory_space<smem>>, %arg3: memref<2xi32, #tpu.memory_space<smem>>) -> (i32, i32, i32) {
    %c0_i32 = arith.constant 0 : i32
    %c0_i32_0 = arith.constant 0 : i32
    %c0_i32_1 = arith.constant 0 : i32
    return %arg0, %c0_i32, %c0_i32_0 : i32, i32, i32
  }
}

</mosaic_0001>

<bundles_post_ra>
// kernel: tpu_custom_call.1
= control target key start
LH: loop header
LB: loop body
LE: loop exit
PB: predicated region body
PF: predicated region fallthrough
CT: control target
= control target key end

     0   :  { %s666_s21 = smov [#allocation3]   ;;  %s888_s0 = inlined_call_operand.hbm [shape: s32[2], index: 0, kind: input, shape index: {}]   ;;  %s889_s3 = inlined_call_operand.hbm [shape: f32[2,4,256], index: 3, kind: input, shape index: {}]   ;;  %s890_s4 = inlined_call_operand.hbm [shape: f32[256,256], index: 4, kind: input, shape index: {}]   ;;  %s891_s5 = inlined_call_operand.vmem [shape: s32[1,256], index: 5, kind: input, shape index: {}]   ;;  %s892_s6 = inlined_call_operand.hbm [shape: f32[2,4,256], index: 6, kind: output, shape index: {}]   ;;  %s893_s1 = inlined_call_operand.vmem [shape: s32[2], index: 1, kind: input, shape index: {}]   ;;  %s894_s2 = inlined_call_operand.hbm [shape: s32[2], index: 2, kind: input, shape index: {}]  }
   0x1   :  { %12 = dma.hbm_to_smem %s888_s0, 16, %s666_s21, [#allocation2] }
   0x2   :  { %s13_s26 = sshll.u32 %s893_s1, 4  ;;  %s14_s26 = int_to_ptr.vmem [resolvable:$true] %s13_s26 }
   0x3   :  { %s578_s27 = scalar_lea.vmem %s14_s26, 16  ;;  %p583_p1 = scmp.lt.s32.totalorder %s14_s26, %s14_s26 }
   0x4   :  { %p579_p0 = scmp.ne.s32.totalorder %s14_s26, %s578_s27  ;;  %p584_p2 = scmp.lt.s32.totalorder %s578_s27, %s578_s27 }
   0x6   :  { %p585_p3 = por %p584_p2, %p583_p1 }
   0x8   :  { %p586_p4 = pnand %p585_p3, %p579_p0 }
   0xa   :  { %589 = shalt.err (!%p586_p4)  }
   0xb   :  { %s667_s28 = smov [#allocation4]   ;;  %s668_s29 = smov [#allocation5]  }
   0xc   :  { %16 = dma.vmem_to_smem %s14_s26, 16, %s667_s28, [#allocation2] }
   0xd   :  { %18 = dma.hbm_to_smem %s894_s2, 16, %s668_s29, [#allocation2] }
   0xe   :  { %658 = dma.done.wait [#allocation2], 48 }
   0xf   :  { %659 = vsyncadd [#allocation2], 4294967248 }
  0x10   :  { %20 = sfence }
  0x11   :  { %21 = vsyncpa [#allocation7], 0 }
  0x12   :  { %22 = vsyncpa [#allocation10], 0 }
  0x13   :  { %23 = vsyncpa [#allocation8], 0  ;;  %s669_s0 = smov [#allocation6]  }
  0x14   :  { %s29_s1 = sshll.u32 %s669_s0, 4  ;;  %s30_s1 = int_to_ptr.vmem [resolvable:$true] %s29_s1 }
  0x15   :  { %s606_s8 = scalar_lea.vmem %s30_s1, 256  ;;  %p611_p6 = scmp.lt.s32.totalorder %s30_s1, %s30_s1 }
  0x16   :  { %p607_p5 = scmp.ne.s32.totalorder %s30_s1, %s606_s8  ;;  %p612_p7 = scmp.lt.s32.totalorder %s606_s8, %s606_s8 }
  0x18   :  { %p613_p8 = por %p612_p7, %p611_p6 }
  0x1a   :  { %p614_p9 = pnand %p613_p8, %p607_p5 }
  0x1c   :  { %617 = shalt.err (!%p614_p9)
}
  0x1d   :  { %s670_s9 = smov 128   ;;  %s671_s10 = smov 8  }
  0x1e   :  { %35 = dma.hbm_to_vmem [thread:$0]  %s889_s3, 256, %s30_s1, [#allocation7], %s670_s9, %s670_s9, %s671_s10  }
  0x1f   :  { %s672_s12 = smov [#allocation9]  }
  0x20   :  { %s41_s13 = sshll.u32 %s672_s12, 4  ;;  %s42_s13 = int_to_ptr.vmem [resolvable:$true] %s41_s13 }
  0x21   :  { %s626_s14 = scalar_lea.vmem %s42_s13, 8192  ;;  %p631_p11 = scmp.lt.s32.totalorder %s42_s13, %s42_s13 }
  0x22   :  { %p627_p10 = scmp.ne.s32.totalorder %s42_s13, %s626_s14  ;;  %p632_p12 = scmp.lt.s32.totalorder %s626_s14, %s626_s14 }
  0x24   :  { %p633_p13 = por %p632_p12, %p631_p11 }
  0x26   :  { %p634_p0 = pnand %p633_p13, %p627_p10 }
  0x28   :  { %637 = shalt.err (!%p634_p0)
}
  0x29   :  { %s673_s15 = smov 256   ;;  %s674_s16 = smov 16  }
  0x2a   :  { %47 = dma.hbm_to_vmem [thread:$0]  %s890_s4, 8192, %s42_s13, [#allocation10], %s673_s15, %s673_s15, %s674_s16  }
  0x2b   :  { %660 = dma.done.wait [#allocation7], 256  }
  0x2c   :  { %661 = vsyncadd [#allocation7], 4294967040 }
  0x2d   :  { %662 = dma.done.wait [#allocation10], 8192  }
  0x2e   :  { %663 = vsyncadd [#allocation10], 4294959104  ;;  %v99_v0 = vld [vmem:[#allocation9 + $0xf8] sm:$0xff]  ;;  %v98_v1 = vld [vmem:[#allocation9 + $0xf0] sm:$0xff]  ;;  %s551_s3 = sld [smem:[#allocation3 + $0x1]] }
  0x2f   :  { %v97_v2 = vld [vmem:[#allocation9 + $0xe8] sm:$0xff]  ;;  %135 = vmatprep.subr.mxu0 %v99_v0  ;;  %370 = vmatprep.subr.mxu1 %v99_v0  ;;  %v96_v3 = vld [vmem:[#allocation9 + $0xe0] sm:$0xff]  ;;  %v95_v4 = vld [vmem:[#allocation9 + $0xd8] sm:$0xff]  ;;  %s552_s4 = sld [smem:[#allocation4 + $0x1]] }
  0x30   :  { %136 = vmatpush1.msra.mxu0 %v98_v1  ;;  %371 = vmatpush1.msra.mxu1 %v98_v1  ;;  %v94_v5 = vld [vmem:[#allocation9 + $0xd0] sm:$0xff]  ;;  %v93_v6 = vld [vmem:[#allocation9 + $0xc8] sm:$0xff]  ;;  %v92_v7 = vld [vmem:[#allocation9 + $0xc0] sm:$0xff]  ;;  %s61_s19 = sld [smem:[#allocation3]] }
  0x31   :  { %137 = vmatprep.subr.mxu0 %v97_v2  ;;  %372 = vmatprep.subr.mxu1 %v97_v2  ;;  %v91_v8 = vld [vmem:[#allocation9 + $0xb8] sm:$0xff]  ;;  %v90_v9 = vld [vmem:[#allocation9 + $0xb0] sm:$0xff]  ;;  %v89_v10 = vld [vmem:[#allocation9 + $0xa8] sm:$0xff]  ;;  %s62_s20 = sld [smem:[#allocation4]] }
  0x32   :  { %138 = vmatpush1.msra.mxu0 %v96_v3  ;;  %373 = vmatpush1.msra.mxu1 %v96_v3  ;;  %v88_v11 = vld [vmem:[#allocation9 + $0xa0] sm:$0xff]  ;;  %v87_v12 = vld [vmem:[#allocation9 + $0x98] sm:$0xff]  ;;  %v86_v13 = vld [vmem:[#allocation9 + $0x90] sm:$0xff]  ;;  %s735_s21 = sld [smem:[#allocation5 + $0x1]] }
  0x33   :  { %139 = vmatprep.subr.mxu0 %v95_v4  ;;  %374 = vmatprep.subr.mxu1 %v95_v4  ;;  %v85_v14 = vld [vmem:[#allocation9 + $0x88] sm:$0xff]  ;;  %v84_v15 = vld [vmem:[#allocation9 + $0x80] sm:$0xff]  ;;  %v83_v16 = vld [vmem:[#allocation9 + $0x78] sm:$0xff]  ;;  %s737_s23 = sld [smem:[#allocation5]] }
  0x34   :  { %140 = vmatpush1.msra.mxu0 %v94_v5  ;;  %375 = vmatpush1.msra.mxu1 %v94_v5  ;;  %v82_v17 = vld [vmem:[#allocation9 + $0x70] sm:$0xff]  ;;  %v81_v18 = vld [vmem:[#allocation9 + $0x68] sm:$0xff]  ;;  %v80_v19 = vld [vmem:[#allocation9 + $0x60] sm:$0xff]  ;;  %p298_p1 = scmp.gt.s32.totalorder %s551_s3, 0 }
  0x35   :  { %141 = vmatprep.subr.mxu0 %v93_v6  ;;  %376 = vmatprep.subr.mxu1 %v93_v6  ;;  %v79_v20 = vld [vmem:[#allocation9 + $0x58] sm:$0xff]  ;;  %v78_v21 = vld [vmem:[#allocation9 + $0x50] sm:$0xff]  ;;  %v77_v22 = vld [vmem:[#allocation9 + $0x48] sm:$0xff]  ;;  %s299_s22 = ssub.s32 0, %s552_s4 }
  0x36   :  { %142 = vmatpush1.msra.mxu0 %v92_v7  ;;  %377 = vmatpush1.msra.mxu1 %v92_v7  ;;  %v76_v23 = vld [vmem:[#allocation9 + $0x40] sm:$0xff]  ;;  %v75_v24 = vld [vmem:[#allocation9 + $0x38] sm:$0xff]  ;;  %v74_v25 = vld [vmem:[#allocation9 + $0x30] sm:$0xff]  ;;  %s923_s22 = smov (!%p298_p1, %s299_s22), %s552_s4  ;;  %p64_p2 = scmp.gt.s32.totalorder %s61_s19, 0 }
  0x37   :  { %143 = vmatprep.subr.mxu0 %v91_v8  ;;  %378 = vmatprep.subr.mxu1 %v91_v8  ;;  %v73_v26 = vld [vmem:[#allocation9 + $0x28] sm:$0xff]  ;;  %v72_v27 = vld [vmem:[#allocation9 + $0x20] sm:$0xff]  ;;  %v71_v28 = vld [vmem:[#allocation9 + $0x18] sm:$0xff]  ;;  %s65_s24 = ssub.s32 0, %s62_s20 }
  0x38   :  { %144 = vmatpush1.msra.mxu0 %v90_v9  ;;  %379 = vmatpush1.msra.mxu1 %v90_v9  ;;  %v70_v29 = vld [vmem:[#allocation9 + $0x10] sm:$0xff]  ;;  %v69_v30 = vld [vmem:[#allocation9 + $0x8] sm:$0xff]  ;;  %v68_v31 = vld [vmem:[#allocation9] sm:$0xff]  ;;  %s554_s25 = sshll.u32 %s735_s21, 4  ;;  %s925_s24 = smov (!%p64_p2, %s65_s24), %s62_s20 }
  0x39   :  { %145 = vmatprep.subr.mxu0 %v89_v10  ;;  %380 = vmatprep.subr.mxu1 %v89_v10  ;;  %v131_v32 = vld [vmem:[#allocation9 + $0x1f8] sm:$0xff]  ;;  %v130_v33 = vld [vmem:[#allocation9 + $0x1f0] sm:$0xff]  ;;  %v129_v34 = vld [vmem:[#allocation9 + $0x1e8] sm:$0xff]  ;;  %s447_s26 = sadd.s32 %s554_s25, %s923_s22  ;;  %s548_s27 = sshll.u32 %s737_s23, 4 }
  0x3a   :  { %146 = vmatpush1.msra.mxu0 %v88_v11  ;;  %381 = vmatpush1.msra.mxu1 %v88_v11  ;;  %v128_v35 = vld [vmem:[#allocation9 + $0x1e0] sm:$0xff]  ;;  %v127_v36 = vld [vmem:[#allocation9 + $0x1d8] sm:$0xff]  ;;  %v126_v37 = vld [vmem:[#allocation9 + $0x1d0] sm:$0xff]  ;;  %p448_p3 = scmp.gt.s32.totalorder %s447_s26, 0  ;;  %s212_s28 = sadd.s32 %s548_s27, %s925_s24 }
  0x3b   :  { %147 = vmatprep.subr.mxu0 %v87_v12  ;;  %382 = vmatprep.subr.mxu1 %v87_v12  ;;  %v125_v38 = vld [vmem:[#allocation9 + $0x1c8] sm:$0xff]  ;;  %v124_v39 = vld [vmem:[#allocation9 + $0x1c0] sm:$0xff]  ;;  %v123_v40 = vld [vmem:[#allocation9 + $0x1b8] sm:$0xff]  ;;  %s441_s29 = scalar_select %p298_p1, 1, 0 }
  0x3c   :  { %148 = vmatpush1.msra.mxu0 %v86_v13  ;;  %383 = vmatpush1.msra.mxu1 %v86_v13  ;;  %v122_v41 = vld [vmem:[#allocation9 + $0x1b0] sm:$0xff]  ;;  %v121_v42 = vld [vmem:[#allocation9 + $0x1a8] sm:$0xff]  ;;  %v120_v43 = vld [vmem:[#allocation9 + $0x1a0] sm:$0xff]  ;;  %s449_s30 = ssub.s32 256, %s447_s26  ;;  %s450_s7 = ssub.s32 0, %s447_s26 }
  0x3d   :  { %149 = vmatprep.subr.mxu0 %v85_v14  ;;  %384 = vmatprep.subr.mxu1 %v85_v14  ;;  %v119_v44 = vld [vmem:[#allocation9 + $0x198] sm:$0xff]  ;;  %v118_v45 = vld [vmem:[#allocation9 + $0x190] sm:$0xff]  ;;  %v117_v46 = vld [vmem:[#allocation9 + $0x188] sm:$0xff]  ;;  %p213_p4 = scmp.gt.s32.totalorder %s212_s28, 0  ;;  %s214_s0 = ssub.s32 256, %s212_s28  ;;  %v442_v4 = vstv %s441_s29  ;;  %v480_v14 = vstv %s923_s22 }
  0x3e   :  { %150 = vmatpush1.msra.mxu0 %v84_v15  ;;  %385 = vmatpush1.msra.mxu1 %v84_v15  ;;  %v116_v47 = vld [vmem:[#allocation9 + $0x180] sm:$0xff]  ;;  %v115_v48 = vld [vmem:[#allocation9 + $0x178] sm:$0xff]  ;;  %v114_v49 = vld [vmem:[#allocation9 + $0x170] sm:$0xff]  ;;  %s215_s1 = ssub.s32 0, %s212_s28  ;;  %s927_s30 = smov (!%p448_p3, %s449_s30), %s450_s7  ;;  %vm443_vm0 = vcmp.eq.s32.totalorder %v442_v4, 1 }
  0x3f   :  { %151 = vmatprep.subr.mxu0 %v83_v16  ;;  %386 = vmatprep.subr.mxu1 %v83_v16  ;;  %v113_v50 = vld [vmem:[#allocation9 + $0x168] sm:$0xff]  ;;  %v112_v51 = vld [vmem:[#allocation9 + $0x160] sm:$0xff]  ;;  %v111_v52 = vld [vmem:[#allocation9 + $0x158] sm:$0xff]  ;;  %s206_s8 = scalar_select %p64_p2, 1, 0  ;;  %v56_v16 = vlaneseq }
  0x40   :  { %152 = vmatpush1.msra.mxu0 %v82_v17  ;;  %387 = vmatpush1.msra.mxu1 %v82_v17  ;;  %v110_v53 = vld [vmem:[#allocation9 + $0x150] sm:$0xff]  ;;  %v109_v54 = vld [vmem:[#allocation9 + $0x148] sm:$0xff]  ;;  %v108_v55 = vld [vmem:[#allocation9 + $0x140] sm:$0xff]  ;;  %s929_s0 = smov (!%p213_p4, %s214_s0), %s215_s1  ;;  %s452_s2 = sand.u32 255, %s927_s30  }
  0x41   :  { %153 = vmatprep.subr.mxu0 %v81_v18  ;;  %388 = vmatprep.subr.mxu1 %v81_v18  ;;  %v107_v56 = vld [vmem:[#allocation9 + $0x138] sm:$0xff]  ;;  %v106_v57 = vld [vmem:[#allocation9 + $0x130] sm:$0xff]  ;;  %v105_v58 = vld [vmem:[#allocation9 + $0x128] sm:$0xff]  ;;  %v207_v5 = vstv %s206_s8  ;;  %s217_s11 = sand.u32 255, %s929_s0   ;;  %s757_s12 = sand.u32 127, %s452_s2   ;;  %v245_v18 = vstv %s925_s24 }
  0x42   :  { %154 = vmatpush1.msra.mxu0 %v80_v19  ;;  %389 = vmatpush1.msra.mxu1 %v80_v19  ;;  %v104_v59 = vld [vmem:[#allocation9 + $0x120] sm:$0xff]  ;;  %v730_v60 = vld [vmem:[#allocation6] sm:$0xff]  ;;  %v103_v61 = vld [vmem:[#allocation9 + $0x118] sm:$0xff]  ;;  %vm208_vm1 = vcmp.eq.s32.totalorder %v207_v5, 1  ;;  %s761_s13 = sand.u32 127, %s217_s11   ;;  %v250_v19 = vshrl.u32 %v56_v16, 7 }
  0x43   :  { %155 = vmatprep.subr.mxu0 %v79_v20  ;;  %390 = vmatprep.subr.mxu1 %v79_v20  ;;  %v302_v62 = vld [vmem:[#allocation6 + $0x8] sm:$0xff]  ;;  %v102_v63 = vld [vmem:[#allocation9 + $0x110] sm:$0xff]  ;;  %v101_v0 = vld [vmem:[#allocation9 + $0x108] sm:$0xff]  ;;  %v133_v1 = vcombine.high %v730_v60, %v730_v60  ;;  %s468_s16 = ssub.s32 0, %s735_s21  ;;  %s473_s17 = ssub.s32 16, %s735_s21  ;;  %v775_v20 = vand.u32 127, %v56_v16 }
  0x44   :  { %156 = vmatpush1.msra.mxu0 %v78_v21  ;;  %391 = vmatpush1.msra.mxu1 %v78_v21  ;;  %v100_v2 = vld [vmem:[#allocation9 + $0x100] sm:$0xff]  ;;  %v368_v3 = vcombine.high %v302_v62, %v302_v62  ;;  %v59_v15 = vld [vmem:[%s891_s5] sm:$0x3]  ;;  %s555_s18 = sshll.u32 %s468_s16, 4  ;;  %s556_s3 = sshll.u32 %s473_s17, 4 }
  0x45   :  { %157 = vmatprep.subr.mxu0 %v77_v22  ;;  %392 = vmatprep.subr.mxu1 %v77_v22  ;;  %v481_v17 = vadd.s32 %v480_v14, %v59_v15  ;;  %v246_v21 = vadd.s32 %v245_v18, %v59_v15  ;;  %v777_v22 = vsub.s32 0, %v250_v19  ;;  %s233_s5 = ssub.s32 0, %s737_s23  ;;  %s238_s4 = ssub.s32 16, %s737_s23 }
  0x46   :  { %158 = vmatpush1.msra.mxu0 %v76_v23  ;;  %393 = vmatpush1.msra.mxu1 %v76_v23  ;;  %v255_v23 = vsub.s32 1, %v250_v19  ;;  %s549_s19 = sshll.u32 %s233_s5, 4  ;;  %s550_s20 = sshll.u32 %s238_s4, 4 }
  0x47   :  { %159 = vmatprep.subr.mxu0 %v75_v24  ;;  %394 = vmatprep.subr.mxu1 %v75_v24  ;;  %vm482_vm2 = vcmp.ge.s32.totalorder %v481_v17, 0  ;;  %v675_v24 = vmov 0   ;;  %vm496_vm3 = vcmp.lt.s32.totalorder %v481_v17, 16  ;;  %vm247_vm4 = vcmp.ge.s32.totalorder %v246_v21, 0  ;;  %s454_s21 = sshrl.u32 %s452_s2, 7  ;;  %s219_s22 = sshrl.u32 %s217_s11, 7 }
  0x48   :  { %160 = vmatpush1.msra.mxu0 %v74_v25  ;;  %395 = vmatpush1.msra.mxu1 %v74_v25  ;;  %v483_v25 = vsel %vm482_vm2, 1, %v675_v24  ;;  %vm261_vm9 = vcmp.lt.s32.totalorder %v246_v21, 16  ;;  %s463_s23 = sand.u32 1, %s454_s21  ;;  %s228_s24 = sand.u32 1, %s219_s22 }
  0x49   :  { %161 = vmatprep.subr.mxu0 %v73_v26  ;;  %396 = vmatprep.subr.mxu1 %v73_v26  ;;  %v58_v26 = vadd.s32 128, %v775_v20  ;;  %s676_s25 = smov [#allocation11]  }
  0x4a   :  { %162 = vmatpush1.msra.mxu0 %v72_v27  ;;  %397 = vmatpush1.msra.mxu1 %v72_v27  ;;  %v470_v27 = vstv %s555_s18  ;;  %s535_s26 = sshll.u32 %s676_s25, 4  ;;  %s536_s26 = int_to_ptr.vmem [resolvable:$true] %s535_s26 }
  0x4b   :  { %163 = vmatprep.subr.mxu0 %v71_v28  ;;  %398 = vmatprep.subr.mxu1 %v71_v28  ;;  %v475_v28 = vstv %s556_s3  ;;  %vm784_vm5 = vcmp.ge.s32.totalorder %v775_v20, %v470_v27  ;;  %vm793_vm7 = vcmp.ge.s32.totalorder %v58_v26, %v470_v27  ;;  %s638_s27 = scalar_lea.vmem %s536_s26, 256  ;;  %p643_p6 = scmp.lt.s32.totalorder %s536_s26, %s536_s26 }
  0x4c   :  { %164 = vmatpush1.msra.mxu0 %v70_v29  ;;  %399 = vmatpush1.msra.mxu1 %v70_v29  ;;  %v487_v29 = vrot.slane %v483_v25, %v777_v22  ;;  %vm789_vm6 = vcmp.lt.s32.totalorder %v775_v20, %v475_v28  ;;  %vm797_vm8 = vcmp.lt.s32.totalorder %v58_v26, %v475_v28  ;;  %p639_p5 = scmp.ne.s32.totalorder %s536_s26, %s638_s27  ;;  %p644_p7 = scmp.lt.s32.totalorder %s638_s27, %s638_s27 }
  0x4d   :  { %165 = vmatprep.subr.mxu0 %v69_v30  ;;  %400 = vmatprep.subr.mxu1 %v69_v30  ;;  %vm478_vm10 = vmand %vm784_vm5, %vm789_vm6 }
  0x4e   :  { %166 = vmatpush1.msra.mxu0 %v68_v31  ;;  %401 = vmatpush1.msra.mxu1 %v68_v31  ;;  %vm492_vm11 = vcmp.ne.s32.totalorder %v487_v29, 0  ;;  %vm479_vm12 = vmand %vm793_vm7, %vm797_vm8  ;;  %p645_p8 = por %p644_p7, %p643_p6 }
  0x4f   :  { %167 = vmatprep.subr.mxu0 %v131_v32  ;;  %402 = vmatprep.subr.mxu1 %v131_v32  ;;  %v491_v32 = vrot.slane %v483_v25, %v255_v23 }
  0x50   :  { %168 = vmatpush2.msra.mxu0 %v130_v33  ;;  %403 = vmatpush2.msra.mxu1 %v130_v33  ;;  %v497_v33 = vsel %vm496_vm3, 1, %v675_v24  ;;  %p646_p9 = pnand %p645_p8, %p639_p5 }
  0x51   :  { %169 = vmatprep.subr.mxu0 %v129_v34  ;;  %404 = vmatprep.subr.mxu1 %v129_v34  ;;  %vm493_vm13 = vcmp.ne.s32.totalorder %v491_v32, 0 }
  0x52   :  { %170 = vmatpush2.msra.mxu0 %v128_v35  ;;  %405 = vmatpush2.msra.mxu1 %v128_v35  ;;  %vm829_vm3 = vmand %vm479_vm12, %vm493_vm13 }
  0x53   :  { %171 = vmatprep.subr.mxu0 %v127_v36  ;;  %406 = vmatprep.subr.mxu1 %v127_v36  ;;  %v248_v36 = vsel %vm247_vm4, 1, %v675_v24 }
  0x54   :  { %172 = vmatpush2.msra.mxu0 %v126_v37  ;;  %407 = vmatpush2.msra.mxu1 %v126_v37  ;;  %v235_v37 = vstv %s549_s19 }
  0x55   :  { %173 = vmatprep.subr.mxu0 %v125_v38  ;;  %408 = vmatprep.subr.mxu1 %v125_v38  ;;  %v240_v38 = vstv %s550_s20  ;;  %vm812_vm14 = vcmp.ge.s32.totalorder %v775_v20, %v235_v37 }
  0x56   :  { %174 = vmatpush2.msra.mxu0 %v124_v39  ;;  %409 = vmatpush2.msra.mxu1 %v124_v39  ;;  %v501_v39 = vrot.slane %v497_v33, %v777_v22  ;;  %vm817_vm15 = vcmp.lt.s32.totalorder %v775_v20, %v240_v38  ;;  %vm242_vm2 = vcmp.lt.s32.totalorder %v58_v26, %v240_v38 }
  0x57   :  { %175 = vmatprep.subr.mxu0 %v123_v40  ;;  %410 = vmatprep.subr.mxu1 %v123_v40  ;;  %v252_v40 = vrot.slane %v248_v36, %v777_v22  ;;  %vm243_vm5 = vmand %vm812_vm14, %vm817_vm15 }
  0x58   :  { %176 = vmatpush2.msra.mxu0 %v122_v41  ;;  %411 = vmatpush2.msra.mxu1 %v122_v41  ;;  %v262_v41 = vsel %vm261_vm9, 1, %v675_v24  ;;  %vm833_vm4 = vcmp.ne.s32.totalorder %v501_v39, 0 }
  0x59   :  { %177 = vmatprep.subr.mxu0 %v121_v42  ;;  %412 = vmatprep.subr.mxu1 %v121_v42  ;;  %vm257_vm6 = vcmp.ne.s32.totalorder %v252_v40, 0 }
  0x5a   :  { %178 = vmatpush2.msra.mxu0 %v120_v43  ;;  %413 = vmatpush2.msra.mxu1 %v120_v43 }
  0x5b   :  { %179 = vmatprep.subr.mxu0 %v119_v44  ;;  %414 = vmatprep.subr.mxu1 %v119_v44  ;;  %v256_v44 = vrot.slane %v248_v36, %v255_v23 }
  0x5c   :  { %180 = vmatpush2.msra.mxu0 %v118_v45  ;;  %415 = vmatpush2.msra.mxu1 %v118_v45 }
  0x5d   :  { %181 = vmatprep.subr.mxu0 %v117_v46  ;;  %416 = vmatprep.subr.mxu1 %v117_v46  ;;  %v505_v46 = vrot.slane %v497_v33, %v255_v23  ;;  %vm258_vm8 = vcmp.ne.s32.totalorder %v256_v44, 0 }
  0x5e   :  { %182 = vmatpush2.msra.mxu0 %v116_v47  ;;  %417 = vmatpush2.msra.mxu1 %v116_v47 }
  0x5f   :  { %183 = vmatprep.subr.mxu0 %v115_v48  ;;  %418 = vmatprep.subr.mxu1 %v115_v48  ;;  %v911_v48 = vmov 0  ;;  %vm507_vm9 = vcmp.ne.s32.totalorder %v505_v46, 0 }
  0x60   :  { %184 = vmatpush2.msra.mxu0 %v114_v49  ;;  %419 = vmatpush2.msra.mxu1 %v114_v49  ;;  %v912_v48 = vsel %vm829_vm3, 4294967295, %v911_v48 }
  0x61   :  { %185 = vmatprep.subr.mxu0 %v113_v50  ;;  %420 = vmatprep.subr.mxu1 %v113_v50  ;;  %v266_v50 = vrot.slane %v262_v41, %v777_v22  ;;  %vm915_vm14 = vnez %v912_v48 }
  0x62   :  { %186 = vmatpush2.msra.mxu0 %v112_v51  ;;  %421 = vmatpush2.msra.mxu1 %v112_v51  ;;  %v270_v51 = vrot.slane %v262_v41, %v255_v23  ;;  %vm509_vm15 = vmand %vm915_vm14, %vm507_vm9 }
  0x63   :  { %187 = vmatprep.subr.mxu0 %v111_v52  ;;  %422 = vmatprep.subr.mxu1 %v111_v52  ;;  %vm271_vm12 = vcmp.ne.s32.totalorder %v266_v50, 0 }
  0x64   :  { %188 = vmatpush2.msra.mxu0 %v110_v53  ;;  %423 = vmatpush2.msra.mxu1 %v110_v53  ;;  %vm272_vm3 = vcmp.ne.s32.totalorder %v270_v51, 0  ;;  %v511_v53 = vsel %vm509_vm15, 1, %v675_v24 }
  0x65   :  { %189 = vmatprep.subr.mxu0 %v109_v54  ;;  %424 = vmatprep.subr.mxu1 %v109_v54 }
  0x66   :  { %190 = vmatpush2.msra.mxu0 %v108_v55  ;;  %425 = vmatpush2.msra.mxu1 %v108_v55 }
  0x67   :  { %191 = vmatprep.subr.mxu0 %v107_v56  ;;  %426 = vmatprep.subr.mxu1 %v107_v56  ;;  %v464_v56 = vstv %s463_s23 }
  0x68   :  { %192 = vmatpush2.msra.mxu0 %v106_v57  ;;  %427 = vmatpush2.msra.mxu1 %v106_v57  ;;  %v459_v57 = vstv %s757_s12 }
  0x69   :  { %193 = vmatprep.subr.mxu0 %v105_v58  ;;  %428 = vmatprep.subr.mxu1 %v105_v58  ;;  %v229_v58 = vstv %s228_s24 }
  0x6a   :  { %194 = vmatpush2.msra.mxu0 %v104_v59  ;;  %429 = vmatpush2.msra.mxu1 %v104_v59  ;;  %v224_v59 = vstv %s761_s13 }
  0x6b   :  { %195 = vmatprep.subr.mxu0 %v103_v61  ;;  %430 = vmatprep.subr.mxu1 %v103_v61 }
  0x6c   :  { %196 = vmatpush2.msra.mxu0 %v102_v63  ;;  %431 = vmatpush2.msra.mxu1 %v102_v63  ;;  %v519_v63 = vrot.slane %v511_v53, %v777_v22 }
  0x6d   :  { %197 = vmatprep.subr.mxu0 %v101_v0  ;;  %432 = vmatprep.subr.mxu1 %v101_v0 }
  0x6e   :  { %198 = vmatpush2.msra.mxu0 %v100_v2  ;;  %199 = vmatprep.mubr.f32.mxu0 %v133_v1 }
  0x6f   :  { %433 = vmatpush2.msra.mxu1 %v100_v2  ;;  %434 = vmatprep.mubr.f32.mxu1 %v368_v3 }
  0x70   :  { %200 = vmatmul.mubr.f32.vlgmr.msra.gmra.mxu0 %v730_v60  ;;  %435 = vmatmul.mubr.f32.vlgmr.msra.gmra.mxu1 %v302_v62 }
 0x130   :  { %v201_v6 = vpop.f32.mrf.mxu0  ;;  %v436_v7 = vpop.f32.mrf.mxu1 }
 0x131   :  { %v444_v8 = vsel %vm443_vm0, %v436_v7, %v302_v62  ;;  %v209_v9 = vsel %vm208_vm1, %v201_v6, %v730_v60 }
 0x132   :  { %v438_v10 = vpop.f32.mrf.mxu1  ;;  %455 = vrot.lane.b32.xlu1 %v444_v8, %s757_s12  ;;  %v203_v11 = vpop.f32.mrf.mxu0  ;;  %220 = vrot.lane.b32.xlu0 %v209_v9, %s761_s13 }
 0x133   :  { %v445_v12 = vsel %vm443_vm0, %v438_v10, %v368_v3  ;;  %v210_v13 = vsel %vm208_vm1, %v203_v11, %v133_v1  ;;  %vm821_vm0 = vmand %vm478_vm10, %vm492_vm11  ;;  %vm825_vm1 = vcmp.ge.s32.totalorder %v58_v26, %v235_v37 }
 0x134   :  { %vm244_vm7 = vmand %vm825_vm1, %vm242_vm2 }
 0x135   :  { %vm508_vm10 = vmand %vm821_vm0, %vm833_vm4  ;;  %vm460_vm0 = vcmp.lt.s32.totalorder %v775_v20, %v459_v57  ;;  %vm465_vm4 = vcmp.ne.s32.totalorder %v464_v56, 0 }
 0x136   :  { %457 = vrot.lane.b32.xlu1 %v445_v12, %s757_s12  ;;  %222 = vrot.lane.b32.xlu0 %v210_v13, %s761_s13  ;;  %vm259_vm11 = vmand %vm243_vm5, %vm257_vm6  ;;  %v510_v52 = vsel %vm508_vm10, 1, %v675_v24  ;;  %vm230_vm5 = vcmp.ne.s32.totalorder %v229_v58, 0 }
 0x137   :  { %vm260_vm13 = vmand %vm244_vm7, %vm258_vm8  ;;  %v515_v62 = vrot.slane %v510_v52, %v777_v22  ;;  %vm866_vm7 = vcmp.eq.s32.totalorder %v519_v63, 1 }
 0x138   :  { %vm273_vm1 = vmand %vm259_vm11, %vm271_vm12 }
 0x139   :  { %vm274_vm2 = vmand %vm260_vm13, %vm272_vm3  ;;  %v275_v54 = vsel %vm273_vm1, 1, %v675_v24  ;;  %vm225_vm3 = vcmp.lt.s32.totalorder %v775_v20, %v224_v59  ;;  %vm862_vm6 = vcmp.eq.s32.totalorder %v515_v62, 1 }
 0x13a   :  { %v276_v55 = vsel %vm274_vm2, 1, %v675_v24  ;;  %v280_v0 = vrot.slane %v275_v54, %v777_v22 }
 0x13b   :  { %v284_v1 = vrot.slane %v276_v55, %v777_v22 }
 0x13c   :  { %vm870_vm8 = vcmp.eq.s32.totalorder %v280_v0, 1 }
 0x13d   :  { %vm286_vm9 = vcmp.eq.s32.totalorder %v284_v1, 1 }
 0x1a4   :  { %v456_v60 = vpop.permute.xlu1 %455  ;;  %v221_v61 = vpop.permute.xlu0 %220 }
 0x1a8   :  { %v458_v2 = vpop.permute.xlu1 %457  ;;  %v223_v5 = vpop.permute.xlu0 %222 }
 0x1a9   :  { %v461_v7 = vsel %vm460_vm0, %v456_v60, %v458_v2  ;;  %v462_v8 = vsel %vm460_vm0, %v458_v2, %v456_v60  ;;  %v226_v9 = vsel %vm225_vm3, %v221_v61, %v223_v5  ;;  %v227_v10 = vsel %vm225_vm3, %v223_v5, %v221_v61 }
 0x1aa   :  { %v466_v11 = vsel %vm465_vm4, %v461_v7, %v462_v8  ;;  %v467_v12 = vsel %vm465_vm4, %v462_v8, %v461_v7  ;;  %v231_v13 = vsel %vm230_vm5, %v226_v9, %v227_v10  ;;  %v232_v14 = vsel %vm230_vm5, %v227_v10, %v226_v9 }
 0x1ab   :  { %v522_v15 = vsel %vm862_vm6, %v466_v11, 0.0  ;;  %v523_v16 = vsel %vm866_vm7, %v467_v12, 0.0  ;;  %v287_v17 = vsel %vm870_vm8, %v231_v13, 0.0  ;;  %v288_v18 = vsel %vm286_vm9, %v232_v14, 0.0 }
 0x1ac   :  { %v291_v19 = vcombine.low %v287_v17, %v288_v18  ;;  %v526_v20 = vcombine.low %v522_v15, %v523_v16 }
 0x1ae   :  { %293 = vst [vmem:[#allocation11] sm:$0xff] %v291_v19  ;;  %529 = vst [vmem:[#allocation11 + $0x8] sm:$0xff] %v526_v20 }
 0x1af   :  { %649 = shalt.err (!%p646_p9)
}
 0x1b0   :  { %541 = dma.vmem_to_hbm [thread:$0]  %s536_s26, 256, %s892_s6, [#allocation8], %s670_s9, %s670_s9, %s671_s10  }
 0x1b1   :  { %664 = dma.done.wait [#allocation8], 256  }
 0x1b2   :  { %665 = vsyncadd [#allocation8], 4294967040 }
 0x1b3   :  { %545 = vsyncpa [#allocation7], 1 }
 0x1b4   :  { %546 = vsyncpa [#allocation10], 1 }
 0x1b5   :  { %547 = vsyncpa [#allocation8], 1 }

</bundles_post_ra>
